<compile_context>
chip_gen: v7x
topology: tpu7x:2x2x1
jax: 0.10.0
libtpu: 0.0.40
codegen_flags: <defaults>
</compile_context>

<pallas_src>
import functools

import jax
import jax.numpy as jnp
from jax.experimental import pallas as pl
from jax.experimental.pallas import tpu as pltpu

F32 = jnp.float32


# ---------------------------------------------------------------------------
# Fused kernel: o = ReLU(LayerNorm(x @ w + b))
#   LayerNorm over the last dim, biased variance, eps=1e-5 (torch defaults).
#   p_ref rows: 0 = Linear bias, 1 = LN gamma, 2 = LN beta.
# ---------------------------------------------------------------------------
def _sem_emb_kernel(x_ref, w_ref, p_ref, o_ref, *, eps):
    y = jnp.dot(x_ref[...], w_ref[...], preferred_element_type=jnp.float32)
    y = y + p_ref[0:1, :]                                    # (tm, dim) + (1, dim)
    mu = jnp.mean(y, axis=-1, keepdims=True)
    msq = jnp.mean(y * y, axis=-1, keepdims=True)
    var = jnp.maximum(msq - mu * mu, 0.0)                    # one-pass variance
    yn = (y - mu) * jax.lax.rsqrt(var + eps)
    o_ref[...] = jnp.maximum(yn * p_ref[1:2, :] + p_ref[2:3, :], 0.0).astype(o_ref.dtype)


def semantic_embedding(features, w, b, gamma, beta, *, block_rows=2048, eps=1e-5,
                       out_dtype=None):
    """features: (B, N, init_dim) -> (B, N, dim).  w: (init_dim, dim); b/gamma/beta: (1, dim)."""
    B, N, init_dim = features.shape
    dim = w.shape[1]
    out_dtype = features.dtype if out_dtype is None else out_dtype
    M = B * N
    x = features.reshape(M, init_dim)

    # Stack the three (1, dim) parameter vectors into one resident block.
    params = jnp.concatenate(
        [b.reshape(1, dim), gamma.reshape(1, dim), beta.reshape(1, dim)], axis=0)

    # ---- Row-tile sizing ----------------------------------------------------
    # * multiple of 8 sublanes (robust to arbitrary caller block_rows),
    # * at least ~512 rows when M is large (per-step overhead ~0.35 us),
    # * but small enough that the grid has ~8 steps (v7x megacore / pipeline ramp).
    br = max(8, (int(block_rows) // 8) * 8)
    rows8 = 8 * pl.cdiv(M, 8)                       # M rounded up to a sublane multiple
    target_steps = 8
    tm_for_steps = 8 * pl.cdiv(M, 8 * target_steps)
    tm = min(br, rows8, max(512, tm_for_steps))
    grid = (pl.cdiv(M, tm),)

    out_bytes = jnp.dtype(out_dtype).itemsize
    in_bytes = jnp.dtype(x.dtype).itemsize

    out = pl.pallas_call(
        functools.partial(_sem_emb_kernel, eps=eps),
        out_shape=jax.ShapeDtypeStruct((M, dim), out_dtype),
        grid_spec=pltpu.PrefetchScalarGridSpec(
            num_scalar_prefetch=0,
            grid=grid,
            in_specs=[
                pl.BlockSpec((tm, init_dim), lambda i: (i, 0)),   # activations: tiled rows
                pl.BlockSpec((init_dim, dim), lambda i: (0, 0)),  # weight: resident
                pl.BlockSpec((3, dim), lambda i: (0, 0)),         # bias/gamma/beta: resident
            ],
            out_specs=pl.BlockSpec((tm, dim), lambda i: (i, 0)),  # lane-dense (dim=128) stores
        ),
        compiler_params=pltpu.CompilerParams(
            dimension_semantics=("parallel",)),                   # v7x: shard row tiles across TCs
        cost_estimate=pl.CostEstimate(
            flops=2 * M * init_dim * dim,
            transcendentals=0,
            bytes_accessed=M * init_dim * in_bytes
                           + M * dim * out_bytes
                           + (init_dim + 3) * dim * 4),
    )(x, w, params)

    return out.reshape(B, N, dim)


# ---------------------------------------------------------------------------
# Pure-JAX reference (for correctness check)
# ---------------------------------------------------------------------------
def semantic_embedding_ref(features, w, b, gamma, beta, eps=1e-5):
    y = jnp.einsum('bnd,de->bne', features, w) + b[0]
    mu = jnp.mean(y, axis=-1, keepdims=True)
    var = jnp.mean((y - mu) ** 2, axis=-1, keepdims=True)
    yn = (y - mu) / jnp.sqrt(var + eps)
    return jnp.maximum(yn * gamma[0] + beta[0], 0.0)


# ---------------------------------------------------------------------------
# Main
# ---------------------------------------------------------------------------
if __name__ == "__main__":
    init_dim, dim = 6, 128  # input feature dim -> embedding dim (lane-dense output)

    key = jax.random.PRNGKey(0)
    kx, kw, kb, kg, kbt = jax.random.split(key, 5)

    w = (0.02 * jax.random.truncated_normal(kw, -2.0, 2.0, (init_dim, dim))).astype(F32)
    b = (0.01 * jax.random.normal(kb, (1, dim))).astype(F32)
    gamma = (1.0 + 0.1 * jax.random.normal(kg, (1, dim))).astype(F32)
    beta = (0.01 * jax.random.normal(kbt, (1, dim))).astype(F32)

    # Two shapes: one evenly tiled, one with a ragged last block (exercises masking,
    # i.e. the removal of the host-side pad / slice).
    for (B, N) in [(2, 64), (2, 61)]:
        features = jax.random.normal(kx, (B, N, init_dim), F32)

        out = semantic_embedding(features, w, b, gamma, beta)
        out = jax.block_until_ready(out)

        assert out.shape == (B, N, dim)
        assert bool(jnp.all(jnp.isfinite(out)))

        ref = semantic_embedding_ref(features, w, b, gamma, beta)
        assert bool(jnp.allclose(out, ref, rtol=1e-4, atol=1e-4)), \
            float(jnp.max(jnp.abs(out - ref)))

    print("KERNEL_OK")
</pallas_src>

<mosaic_0001>
module attributes {stable_mosaic.version = 11 : i64} {
  func.func @_sem_emb_kernel(%arg0: i32, %arg1: memref<128x6xf32, #tpu.memory_space<vmem>>, %arg2: memref<6x128xf32, #tpu.memory_space<vmem>>, %arg3: memref<3x128xf32, #tpu.memory_space<vmem>>, %arg4: memref<128x128xf32, #tpu.memory_space<vmem>>) attributes {dimension_semantics = [#tpu.dimension_semantics<parallel>], iteration_bounds = array<i64: 1>, scalar_prefetch = 0 : i64, scratch_operands = 0 : i64, tpu.core_type = #tpu.core_type<tc>, window_params = [{transform_indices = @transform_0, window_bounds = array<i64: 128, 6>}, {pipeline_mode = #tpu.pipeline_mode<synchronous>, transform_indices = @transform_1, window_bounds = array<i64: 6, 128>}, {pipeline_mode = #tpu.pipeline_mode<synchronous>, transform_indices = @transform_2, window_bounds = array<i64: 3, 128>}, {transform_indices = @transform_3, window_bounds = array<i64: 128, 128>}]} {
    %c0 = arith.constant 0 : index
    %c0_0 = arith.constant 0 : index
    %0 = vector.load %arg1[%c0, %c0_0] : memref<128x6xf32, #tpu.memory_space<vmem>>, vector<128x6xf32>
    %c0_1 = arith.constant 0 : index
    %c0_2 = arith.constant 0 : index
    %1 = vector.load %arg2[%c0_1, %c0_2] : memref<6x128xf32, #tpu.memory_space<vmem>>, vector<6x128xf32>
    %cst = arith.constant dense<0.000000e+00> : vector<128x128xf32>
    %2 = tpu.matmul %0, %1, %cst {dimension_numbers = #tpu.dot_dimension_numbers<[1], [0], [0], [1], [0, 0, 1, 1], [], []>} : vector<128x6xf32>, vector<6x128xf32>, vector<128x128xf32> -> vector<128x128xf32>
    %c0_3 = arith.constant 0 : index
    %c0_4 = arith.constant 0 : index
    %3 = vector.load %arg3[%c0_3, %c0_4] : memref<3x128xf32, #tpu.memory_space<vmem>>, vector<1x128xf32>
    %4 = vector.broadcast %3 : vector<1x128xf32> to vector<128x128xf32>
    %5 = arith.addf %2, %4 : vector<128x128xf32>
    %cst_5 = arith.constant dense<0.000000e+00> : vector<128xf32>
    %6 = vector.multi_reduction <add>, %5, %cst_5 [1] : vector<128x128xf32> to vector<128xf32>
    %7 = vector.shape_cast %6 : vector<128xf32> to vector<128x1xf32>
    %cst_6 = arith.constant 1.280000e+02 : f32
    %8 = vector.broadcast %cst_6 : f32 to vector<128x1xf32>
    %9 = arith.divf %7, %8 : vector<128x1xf32>
    %10 = arith.mulf %5, %5 : vector<128x128xf32>
    %cst_7 = arith.constant dense<0.000000e+00> : vector<128xf32>
    %11 = vector.multi_reduction <add>, %10, %cst_7 [1] : vector<128x128xf32> to vector<128xf32>
    %12 = vector.shape_cast %11 : vector<128xf32> to vector<128x1xf32>
    %cst_8 = arith.constant 1.280000e+02 : f32
    %13 = vector.broadcast %cst_8 : f32 to vector<128x1xf32>
    %14 = arith.divf %12, %13 : vector<128x1xf32>
    %15 = arith.mulf %9, %9 : vector<128x1xf32>
    %16 = arith.subf %14, %15 : vector<128x1xf32>
    %cst_9 = arith.constant 0.000000e+00 : f32
    %17 = vector.broadcast %cst_9 : f32 to vector<128x1xf32>
    %18 = arith.maximumf %16, %17 : vector<128x1xf32>
    %19 = vector.broadcast %9 : vector<128x1xf32> to vector<128x128xf32>
    %20 = arith.subf %5, %19 : vector<128x128xf32>
    %cst_10 = arith.constant 9.99999974E-6 : f32
    %21 = vector.broadcast %cst_10 : f32 to vector<128x1xf32>
    %22 = arith.addf %18, %21 : vector<128x1xf32>
    %23 = math.rsqrt %22 : vector<128x1xf32>
    %24 = vector.broadcast %23 : vector<128x1xf32> to vector<128x128xf32>
    %25 = arith.mulf %20, %24 : vector<128x128xf32>
    %c1 = arith.constant 1 : index
    %c0_11 = arith.constant 0 : index
    %26 = vector.load %arg3[%c1, %c0_11] : memref<3x128xf32, #tpu.memory_space<vmem>>, vector<1x128xf32>
    %27 = vector.broadcast %26 : vector<1x128xf32> to vector<128x128xf32>
    %28 = arith.mulf %25, %27 : vector<128x128xf32>
    %c2 = arith.constant 2 : index
    %c0_12 = arith.constant 0 : index
    %29 = vector.load %arg3[%c2, %c0_12] : memref<3x128xf32, #tpu.memory_space<vmem>>, vector<1x128xf32>
    %30 = vector.broadcast %29 : vector<1x128xf32> to vector<128x128xf32>
    %31 = arith.addf %28, %30 : vector<128x128xf32>
    %cst_13 = arith.constant 0.000000e+00 : f32
    %32 = vector.broadcast %cst_13 : f32 to vector<128x128xf32>
    %33 = arith.maximumf %31, %32 : vector<128x128xf32>
    %c0_14 = arith.constant 0 : index
    %c0_15 = arith.constant 0 : index
    %34 = vector.load %arg4[%c0_14, %c0_15] : memref<128x128xf32, #tpu.memory_space<vmem>>, vector<128x128xf32>
    tpu.vector_store %arg4[%c0_14, %c0_15], %33 {strides = array<i32>} : memref<128x128xf32, #tpu.memory_space<vmem>>, vector<128x128xf32>,
    return
  }
  func.func @transform_0(%arg0: i32) -> (i32, i32) {
    %c0_i32 = arith.constant 0 : i32
    %c0_i32_0 = arith.constant 0 : i32
    return %arg0, %c0_i32 : i32, i32
  }
  func.func @transform_1(%arg0: i32) -> (i32, i32) {
    %c0_i32 = arith.constant 0 : i32
    %c0_i32_0 = arith.constant 0 : i32
    %c0_i32_1 = arith.constant 0 : i32
    return %c0_i32, %c0_i32_0 : i32, i32
  }
  func.func @transform_2(%arg0: i32) -> (i32, i32) {
    %c0_i32 = arith.constant 0 : i32
    %c0_i32_0 = arith.constant 0 : i32
    %c0_i32_1 = arith.constant 0 : i32
    return %c0_i32, %c0_i32_0 : i32, i32
  }
  func.func @transform_3(%arg0: i32) -> (i32, i32) {
    %c0_i32 = arith.constant 0 : i32
    %c0_i32_0 = arith.constant 0 : i32
    return %arg0, %c0_i32 : i32, i32
  }
}

</mosaic_0001>

<bundles_post_ra>
// kernel: tpu_custom_call.1
= control target key start
LH: loop header
LB: loop body
LE: loop exit
PB: predicated region body
PF: predicated region fallthrough
CT: control target
= control target key end

     0   :  { %vm86_vm0 = vcmask 1045504   ;;  %vm37_vm1 = vcmask 48128   ;;  %s1005_s0 = inlined_call_operand.vmem [shape: f32[128,6], index: 0, kind: input, shape index: {}]   ;;  %s1006_s1 = inlined_call_operand.vmem [shape: f32[6,128], index: 1, kind: input, shape index: {}]   ;;  %s1007_s2 = inlined_call_operand.vmem [shape: f32[3,128], index: 2, kind: input, shape index: {}]   ;;  %s1008_s3 = inlined_call_operand.hbm [shape: f32[128,128], index: 3, kind: output, shape index: {}]  }
   0x1   :  { %v31_v0 = vld [vmem:[%s1006_s1] sm:$0x3f]  ;;  %v16_v3 = vld [vmem:[%s1005_s0 + $0x8] sm:$0xff]  ;;  %v17_v5 = vld [vmem:[%s1005_s0 + $0x10] sm:$0xff] }
   0x2   :  { %v15_v1 = vld [vmem:[%s1005_s0] sm:$0xff]  ;;  %587 = vmatprep.subr.msk.mxu0 %vm86_vm0, %v31_v0  ;;  %613 = vmatprep.subr.msk.mxu1 %vm86_vm0, %v31_v0  ;;  %v24_v4 = vld [vmem:[%s1005_s0 + $0x48] sm:$0xff]  ;;  %v25_v6 = vld [vmem:[%s1005_s0 + $0x50] sm:$0xff] }
   0x3   :  { %v23_v2 = vld [vmem:[%s1005_s0 + $0x40] sm:$0xff]  ;;  %588 = vmatpush3.msk.msra.mxu0 %vm86_vm0, %v31_v0  ;;  %614 = vmatpush3.msk.msra.mxu1 %vm86_vm0, %v31_v0  ;;  %v18_v7 = vld [vmem:[%s1005_s0 + $0x18] sm:$0xff] }
   0x4   :  { %589 = vmatprep.mubr.msk.f32.mxu0 %vm37_vm1, %v15_v1  ;;  %601 = vmatprep.mubr.msk.f32.mxu1 %vm37_vm1, %v23_v2  ;;  %v26_v8 = vld [vmem:[%s1005_s0 + $0x58] sm:$0xff] }
   0x5   :  { %590 = vmatmul.mubr.msk.f32.vlgmr.msra.gmra.mrb[0].mxu0 %vm37_vm1, %v16_v3  ;;  %602 = vmatmul.mubr.msk.f32.vlgmr.msra.gmra.mrb[0].mxu1 %vm37_vm1, %v24_v4 }
   0x6   :  { %592 = vmatprep.mubr.msk.f32.mxu0 %vm37_vm1, %v17_v5  ;;  %604 = vmatprep.mubr.msk.f32.mxu1 %vm37_vm1, %v25_v6 }
   0x7   :  { %8 = vsyncpa [#allocation3], 0  ;;  %v19_v9 = vld [vmem:[%s1005_s0 + $0x20] sm:$0xff]  ;;  %v20_v11 = vld [vmem:[%s1005_s0 + $0x28] sm:$0xff] }
   0x8   :  { %v27_v10 = vld [vmem:[%s1005_s0 + $0x60] sm:$0xff]  ;;  %v28_v12 = vld [vmem:[%s1005_s0 + $0x68] sm:$0xff]  ;;  %v21_v13 = vld [vmem:[%s1005_s0 + $0x30] sm:$0xff] }
   0x9   :  { %593 = vmatmul.mubr.msk.f32.gmra.mrb[2].mxu0 %vm37_vm1, %v18_v7  ;;  %605 = vmatmul.mubr.msk.f32.gmra.mrb[2].mxu1 %vm37_vm1, %v26_v8  ;;  %v29_v14 = vld [vmem:[%s1005_s0 + $0x70] sm:$0xff]  ;;  %v22_v15 = vld [vmem:[%s1005_s0 + $0x38] sm:$0xff]  ;;  %v767_v17 = vld [vmem:[%s1007_s2] ss:$0 sm:$0xff] }
   0xa   :  { %595 = vmatprep.mubr.msk.f32.mxu0 %vm37_vm1, %v19_v9  ;;  %607 = vmatprep.mubr.msk.f32.mxu1 %vm37_vm1, %v27_v10  ;;  %v30_v16 = vld [vmem:[%s1005_s0 + $0x78] sm:$0xff] }
   0xd   :  { %596 = vmatmul.mubr.msk.f32.gmra.mrb[4].mxu0 %vm37_vm1, %v20_v11  ;;  %608 = vmatmul.mubr.msk.f32.gmra.mrb[4].mxu1 %vm37_vm1, %v28_v12 }
   0xe   :  { %598 = vmatprep.mubr.msk.f32.mxu0 %vm37_vm1, %v21_v13  ;;  %610 = vmatprep.mubr.msk.f32.mxu1 %vm37_vm1, %v29_v14 }
  0x11   :  { %599 = vmatmul.mubr.msk.f32.gmra.mrb[6].mxu0 %vm37_vm1, %v22_v15  ;;  %611 = vmatmul.mubr.msk.f32.gmra.mrb[6].mxu1 %vm37_vm1, %v30_v16 }
  0xd8   :  { %v591_v18 = vpop.f32.mrb[0].mxu0  ;;  %v603_v19 = vpop.f32.mrb[0].mxu1 }
  0xd9   :  { %v770_v20 = vadd.f32 %v591_v18, %v767_v17  ;;  %v773_v21 = vadd.f32 %v603_v19, %v767_v17  ;;  %v156_v22 = vpop.f32.mrb[1].mxu0  ;;  %v196_v23 = vpop.f32.mrb[1].mxu1 }
  0xda   :  { %v778_v26 = vadd.f32 %v767_v17, %v156_v22  ;;  %v784_v32 = vadd.f32 %v767_v17, %v196_v23 }
  0xdb   :  { %253 = vadd.xlane.f32.xlu1 %v773_v21  ;;  %237 = vadd.xlane.f32.xlu0 %v770_v20  ;;  %v285_v27 = vmul.f32 %v770_v20, %v770_v20  ;;  %v293_v33 = vmul.f32 %v773_v21, %v773_v21 }
  0xdc   :  { %v594_v24 = vpop.f32.mrb[2].mxu0  ;;  %v606_v25 = vpop.f32.mrb[2].mxu1  ;;  %v284_v39 = vmul.f32 %v778_v26, %v778_v26  ;;  %v292_v43 = vmul.f32 %v784_v32, %v784_v32 }
  0xdd   :  { %v166_v28 = vpop.f32.mrb[3].mxu0  ;;  %v206_v29 = vpop.f32.mrb[3].mxu1  ;;  %v789_v36 = vadd.f32 %v594_v24, %v767_v17  ;;  %v795_v42 = vadd.f32 %v606_v25, %v767_v17 }
  0xde   :  { %v802_v44 = vadd.f32 %v767_v17, %v166_v28  ;;  %v805_v45 = vadd.f32 %v767_v17, %v206_v29 }
  0xdf   :  { %302 = vadd.xlane.f32.xlu1 %v285_v27  ;;  %235 = vadd.xlane.f32.xlu0 %v778_v26  ;;  %v287_v46 = vmul.f32 %v789_v36, %v789_v36  ;;  %v295_v48 = vmul.f32 %v795_v42, %v795_v42 }
  0xe0   :  { %v597_v30 = vpop.f32.mrb[4].mxu0  ;;  %v609_v31 = vpop.f32.mrb[4].mxu1  ;;  %v286_v47 = vmul.f32 %v802_v44, %v802_v44  ;;  %v294_v49 = vmul.f32 %v805_v45, %v805_v45 }
  0xe1   :  { %v176_v34 = vpop.f32.mrb[5].mxu0  ;;  %v216_v35 = vpop.f32.mrb[5].mxu1  ;;  %v818_v50 = vadd.f32 %v597_v30, %v767_v17  ;;  %v824_v52 = vadd.f32 %v609_v31, %v767_v17 }
  0xe2   :  { %v821_v51 = vadd.f32 %v767_v17, %v176_v34  ;;  %v827_v53 = vadd.f32 %v767_v17, %v216_v35 }
  0xe3   :  { %318 = vadd.xlane.f32.xlu1 %v293_v33  ;;  %251 = vadd.xlane.f32.xlu0 %v784_v32  ;;  %v289_v54 = vmul.f32 %v818_v50, %v818_v50  ;;  %v297_v56 = vmul.f32 %v824_v52, %v824_v52 }
  0xe4   :  { %v600_v37 = vpop.f32.mrb[6].mxu0  ;;  %v612_v38 = vpop.f32.mrb[6].mxu1  ;;  %v288_v55 = vmul.f32 %v821_v51, %v821_v51  ;;  %v296_v57 = vmul.f32 %v827_v53, %v827_v53 }
  0xe5   :  { %v186_v40 = vpop.f32.mrb[7].mxu0  ;;  %v226_v41 = vpop.f32.mrb[7].mxu1  ;;  %v842_v58 = vadd.f32 %v600_v37, %v767_v17  ;;  %v848_v60 = vadd.f32 %v612_v38, %v767_v17 }
  0xe6   :  { %v845_v59 = vadd.f32 %v767_v17, %v186_v40  ;;  %v851_v61 = vadd.f32 %v767_v17, %v226_v41 }
  0xe7   :  { %241 = vadd.xlane.f32.xlu1 %v789_v36  ;;  %300 = vadd.xlane.f32.xlu0 %v284_v39  ;;  %v291_v62 = vmul.f32 %v842_v58, %v842_v58  ;;  %v299_v0 = vmul.f32 %v848_v60, %v848_v60 }
  0xe8   :  { %v290_v63 = vmul.f32 %v845_v59, %v845_v59  ;;  %v298_v1 = vmul.f32 %v851_v61, %v851_v61 }
  0xeb   :  { %257 = vadd.xlane.f32.xlu1 %v795_v42  ;;  %316 = vadd.xlane.f32.xlu0 %v292_v43 }
  0xef   :  { %239 = vadd.xlane.f32.xlu1 %v802_v44  ;;  %255 = vadd.xlane.f32.xlu0 %v805_v45 }
  0xf3   :  { %306 = vadd.xlane.f32.xlu1 %v287_v46  ;;  %304 = vadd.xlane.f32.xlu0 %v286_v47 }
  0xf7   :  { %322 = vadd.xlane.f32.xlu1 %v295_v48  ;;  %320 = vadd.xlane.f32.xlu0 %v294_v49  ;;  %v881_v49 = vld [vmem:[%s1007_s2 + $0x1] ss:$0 sm:$0xff] }
  0xfb   :  { %245 = vadd.xlane.f32.xlu1 %v818_v50  ;;  %243 = vadd.xlane.f32.xlu0 %v821_v51 }
  0xff   :  { %261 = vadd.xlane.f32.xlu1 %v824_v52  ;;  %259 = vadd.xlane.f32.xlu0 %v827_v53 }
 0x103   :  { %310 = vadd.xlane.f32.xlu1 %v289_v54  ;;  %308 = vadd.xlane.f32.xlu0 %v288_v55 }
 0x107   :  { %326 = vadd.xlane.f32.xlu1 %v297_v56  ;;  %324 = vadd.xlane.f32.xlu0 %v296_v57 }
 0x10b   :  { %249 = vadd.xlane.f32.xlu1 %v842_v58  ;;  %247 = vadd.xlane.f32.xlu0 %v845_v59 }
 0x10f   :  { %265 = vadd.xlane.f32.xlu1 %v848_v60  ;;  %263 = vadd.xlane.f32.xlu0 %v851_v61 }
 0x113   :  { %314 = vadd.xlane.f32.xlu1 %v291_v62  ;;  %312 = vadd.xlane.f32.xlu0 %v290_v63 }
 0x117   :  { %330 = vadd.xlane.f32.xlu1 %v299_v0  ;;  %328 = vadd.xlane.f32.xlu0 %v298_v1 }
 0x168   :  { %v254_v2 = vpop.xlane.xlu1 %253  ;;  %v238_v3 = vpop.xlane.xlu0 %237 }
 0x169   :  { %v269_v4 = vmul.f32 0.0078125, %v238_v3  ;;  %v277_v7 = vmul.f32 0.0078125, %v254_v2 }
 0x16b   :  { %v349_v8 = vmul.f32 %v269_v4, %v269_v4  ;;  %v357_v14 = vmul.f32 %v277_v7, %v277_v7  ;;  %v397_v47 = vsub.f32 %v770_v20, %v269_v4  ;;  %v892_v20 = vld [vmem:[%s1007_s2 + $0x2] ss:$0 sm:$0xff]  ;;  %v405_v4 = vsub.f32 %v773_v21, %v277_v7  ;;  %s674_s2 = smov [#allocation2]  }
 0x16c   :  { %v303_v5 = vpop.xlane.xlu1 %302  ;;  %v236_v6 = vpop.xlane.xlu0 %235  ;;  %s539_s22 = sshll.u32 %s674_s2, 4  ;;  %s540_s22 = int_to_ptr.vmem [resolvable:$true] %s539_s22 }
 0x16d   :  { %v333_v9 = vmul.f32 0.0078125, %v303_v5  ;;  %v865_v11 = vmul.f32 0.0078125, %v236_v6  ;;  %s650_s23 = scalar_lea.vmem %s540_s22, 2048  ;;  %p655_p1 = scmp.lt.s32.totalorder %s540_s22, %s540_s22 }
 0x16e   :  { %p651_p0 = scmp.ne.s32.totalorder %s540_s22, %s650_s23  ;;  %p656_p2 = scmp.lt.s32.totalorder %s650_s23, %s650_s23 }
 0x16f   :  { %v365_v10 = vsub.f32 %v333_v9, %v349_v8  ;;  %v348_v19 = vmul.f32 %v865_v11, %v865_v11 }
 0x170   :  { %v319_v12 = vpop.xlane.xlu1 %318  ;;  %v252_v13 = vpop.xlane.xlu0 %251  ;;  %p657_p3 = por %p656_p2, %p655_p1 }
 0x171   :  { %v381_v15 = vmax.f32 %v365_v10, 0.0  ;;  %v341_v16 = vmul.f32 0.0078125, %v319_v12  ;;  %v869_v25 = vmul.f32 0.0078125, %v252_v13 }
 0x172   :  { %p658_p4 = pnand %p657_p3, %p651_p0 }
 0x173   :  { %v413_v17 = vadd.f32 1e-05, %v381_v15  ;;  %v373_v18 = vsub.f32 %v341_v16, %v357_v14  ;;  %v356_v33 = vmul.f32 %v869_v25, %v869_v25 }
 0x174   :  { %v242_v22 = vpop.xlane.xlu1 %241  ;;  %v301_v23 = vpop.xlane.xlu0 %300 }
 0x175   :  { %618 = vrsqrt.f32 %v413_v17  ;;  %v389_v24 = vmax.f32 %v373_v18, 0.0  ;;  %v332_v27 = vmul.f32 0.0078125, %v301_v23  ;;  %v873_v39 = vmul.f32 0.0078125, %v242_v22 }
 0x176   :  { %v396_v22 = vsub.f32 %v778_v26, %v865_v11  ;;  %v404_v26 = vsub.f32 %v784_v32, %v869_v25 }
 0x177   :  { %v421_v28 = vadd.f32 1e-05, %v389_v24  ;;  %v364_v29 = vsub.f32 %v332_v27, %v348_v19  ;;  %v351_v56 = vmul.f32 %v873_v39, %v873_v39 }
 0x178   :  { %v258_v30 = vpop.xlane.xlu1 %257  ;;  %v317_v31 = vpop.xlane.xlu0 %316 }
 0x179   :  { %620 = vrsqrt.f32 %v421_v28  ;;  %v380_v34 = vmax.f32 %v364_v29, 0.0  ;;  %v340_v35 = vmul.f32 0.0078125, %v317_v31  ;;  %v885_v57 = vmul.f32 0.0078125, %v258_v30 }
 0x17b   :  { %v412_v37 = vadd.f32 1e-05, %v380_v34  ;;  %v372_v38 = vsub.f32 %v340_v35, %v356_v33  ;;  %v359_v13 = vmul.f32 %v885_v57, %v885_v57 }
 0x17c   :  { %v240_v40 = vpop.xlane.xlu1 %239  ;;  %v256_v41 = vpop.xlane.xlu0 %255 }
 0x17d   :  { %622 = vrsqrt.f32 %v412_v37  ;;  %v388_v43 = vmax.f32 %v372_v38, 0.0  ;;  %v875_v46 = vmul.f32 0.0078125, %v240_v40  ;;  %v887_v62 = vmul.f32 0.0078125, %v256_v41 }
 0x17f   :  { %v619_v48 = vpop.eup %618  ;;  %v420_v54 = vadd.f32 1e-05, %v388_v43  ;;  %v350_v1 = vmul.f32 %v875_v46, %v875_v46  ;;  %v358_v14 = vmul.f32 %v887_v62, %v887_v62 }
 0x180   :  { %v445_v55 = vmul.f32 %v619_v48, %v397_v47  ;;  %v307_v63 = vpop.xlane.xlu1 %306  ;;  %v305_v0 = vpop.xlane.xlu0 %304 }
 0x181   :  { %624 = vrsqrt.f32 %v420_v54  ;;  %v335_v2 = vmul.f32 0.0078125, %v307_v63  ;;  %v334_v3 = vmul.f32 0.0078125, %v305_v0 }
 0x182   :  { %v466_v5 = vmul.f32 %v881_v49, %v445_v55 }
 0x183   :  { %v621_v6 = vpop.eup %620  ;;  %v367_v8 = vsub.f32 %v335_v2, %v351_v56  ;;  %v366_v9 = vsub.f32 %v334_v3, %v350_v1 }
 0x184   :  { %v487_v10 = vadd.f32 %v892_v20, %v466_v5  ;;  %v453_v12 = vmul.f32 %v621_v6, %v405_v4  ;;  %v323_v15 = vpop.xlane.xlu1 %322  ;;  %v321_v16 = vpop.xlane.xlu0 %320 }
 0x185   :  { %v383_v17 = vmax.f32 %v367_v8, 0.0  ;;  %v382_v18 = vmax.f32 %v366_v9, 0.0  ;;  %v343_v19 = vmul.f32 0.0078125, %v323_v15  ;;  %v342_v21 = vmul.f32 0.0078125, %v321_v16 }
 0x186   :  { %v503_v7 = vmax.f32 %v487_v10, 0.0  ;;  %v474_v23 = vmul.f32 %v881_v49, %v453_v12  ;;  %v399_v10 = vsub.f32 %v789_v36, %v873_v39  ;;  %v398_v15 = vsub.f32 %v802_v44, %v875_v46 }
 0x187   :  { %v623_v24 = vpop.eup %622  ;;  %v415_v27 = vadd.f32 1e-05, %v383_v17  ;;  %v414_v28 = vadd.f32 1e-05, %v382_v18  ;;  %v375_v29 = vsub.f32 %v343_v19, %v359_v13  ;;  %v374_v30 = vsub.f32 %v342_v21, %v358_v14 }
 0x188   :  { %519 = vst [vmem:[#allocation2 + $0x8] sm:$0xff] %v503_v7  ;;  %v495_v31 = vadd.f32 %v892_v20, %v474_v23  ;;  %v444_v33 = vmul.f32 %v623_v24, %v396_v22  ;;  %v246_v34 = vpop.xlane.xlu1 %245  ;;  %v244_v35 = vpop.xlane.xlu0 %243  ;;  %v407_v19 = vsub.f32 %v795_v42, %v885_v57  ;;  %v406_v44 = vsub.f32 %v805_v45, %v887_v62 }
 0x189   :  { %626 = vrsqrt.f32 %v415_v27  ;;  %v391_v37 = vmax.f32 %v375_v29, 0.0  ;;  %v390_v38 = vmax.f32 %v374_v30, 0.0  ;;  %v911_v63 = vmul.f32 0.0078125, %v246_v34 }
 0x18a   :  { %v511_v40 = vmax.f32 %v495_v31, 0.0  ;;  %v465_v11 = vmul.f32 %v881_v49, %v444_v33  ;;  %628 = vrsqrt.f32 %v414_v28  ;;  %v913_v0 = vmul.f32 0.0078125, %v244_v35 }
 0x18b   :  { %v625_v41 = vpop.eup %624  ;;  %v423_v43 = vadd.f32 1e-05, %v391_v37  ;;  %v422_v47 = vadd.f32 1e-05, %v390_v38  ;;  %v353_v5 = vmul.f32 %v911_v63, %v911_v63 }
 0x18c   :  { %527 = vst [vmem:[#allocation2 + $0x48] sm:$0xff] %v511_v40  ;;  %v486_v48 = vadd.f32 %v892_v20, %v465_v11  ;;  %v452_v54 = vmul.f32 %v625_v41, %v404_v26  ;;  %v262_v55 = vpop.xlane.xlu1 %261  ;;  %v260_v56 = vpop.xlane.xlu0 %259  ;;  %v352_v6 = vmul.f32 %v913_v0, %v913_v0 }
 0x18d   :  { %630 = vrsqrt.f32 %v423_v43  ;;  %v917_v2 = vmul.f32 0.0078125, %v262_v55  ;;  %v925_v13 = vmul.f32 0.0078125, %v260_v56 }
 0x18e   :  { %v502_v1 = vmax.f32 %v486_v48, 0.0  ;;  %v473_v32 = vmul.f32 %v881_v49, %v452_v54  ;;  %632 = vrsqrt.f32 %v422_v47 }
 0x18f   :  { %v361_v7 = vmul.f32 %v917_v2, %v917_v2  ;;  %v360_v28 = vmul.f32 %v925_v13, %v925_v13 }
 0x190   :  { %518 = vst [vmem:[#allocation2] sm:$0xff] %v502_v1  ;;  %v494_v25 = vadd.f32 %v892_v20, %v473_v32  ;;  %v311_v3 = vpop.xlane.xlu1 %310  ;;  %v309_v4 = vpop.xlane.xlu0 %308 }
 0x191   :  { %v337_v8 = vmul.f32 0.0078125, %v311_v3  ;;  %v336_v9 = vmul.f32 0.0078125, %v309_v4 }
 0x192   :  { %v510_v12 = vmax.f32 %v494_v25, 0.0 }
 0x193   :  { %v627_v14 = vpop.eup %626  ;;  %v369_v16 = vsub.f32 %v337_v8, %v353_v5  ;;  %v368_v17 = vsub.f32 %v336_v9, %v352_v6 }
 0x194   :  { %v629_v18 = vpop.eup %628  ;;  %526 = vst [vmem:[#allocation2 + $0x40] sm:$0xff] %v510_v12  ;;  %v447_v21 = vmul.f32 %v627_v14, %v399_v10  ;;  %v327_v22 = vpop.xlane.xlu1 %326  ;;  %v401_v14 = vsub.f32 %v818_v50, %v911_v63 }
 0x195   :  { %v325_v36 = vpop.xlane.xlu0 %324  ;;  %v446_v39 = vmul.f32 %v629_v18, %v398_v15  ;;  %v385_v23 = vmax.f32 %v369_v16, 0.0  ;;  %v384_v24 = vmax.f32 %v368_v17, 0.0  ;;  %v345_v27 = vmul.f32 0.0078125, %v327_v22 }
 0x196   :  { %v468_v46 = vmul.f32 %v881_v49, %v447_v21  ;;  %v344_v42 = vmul.f32 0.0078125, %v325_v36 }
 0x197   :  { %v631_v57 = vpop.eup %630  ;;  %v467_v29 = vmul.f32 %v881_v49, %v446_v39  ;;  %v417_v30 = vadd.f32 1e-05, %v385_v23  ;;  %v416_v31 = vadd.f32 1e-05, %v384_v24  ;;  %v377_v33 = vsub.f32 %v345_v27, %v361_v7 }
 0x198   :  { %v633_v34 = vpop.eup %632  ;;  %v489_v35 = vadd.f32 %v892_v20, %v468_v46  ;;  %v455_v37 = vmul.f32 %v631_v57, %v407_v19  ;;  %v376_v38 = vsub.f32 %v344_v42, %v360_v28  ;;  %v250_v40 = vpop.xlane.xlu1 %249  ;;  %v400_v7 = vsub.f32 %v821_v51, %v913_v0 }
 0x199   :  { %v248_v26 = vpop.xlane.xlu0 %247  ;;  %v488_v45 = vadd.f32 %v892_v20, %v467_v29  ;;  %v454_v62 = vmul.f32 %v633_v34, %v406_v44  ;;  %634 = vrsqrt.f32 %v417_v30  ;;  %v393_v11 = vmax.f32 %v377_v33, 0.0 }
 0x19a   :  { %v505_v41 = vmax.f32 %v489_v35, 0.0  ;;  %v476_v43 = vmul.f32 %v881_v49, %v455_v37  ;;  %636 = vrsqrt.f32 %v416_v31  ;;  %v392_v47 = vmax.f32 %v376_v38, 0.0 }
 0x19b   :  { %v504_v48 = vmax.f32 %v488_v45, 0.0  ;;  %v475_v54 = vmul.f32 %v881_v49, %v454_v62  ;;  %v425_v55 = vadd.f32 1e-05, %v393_v11  ;;  %v945_v5 = vmul.f32 0.0078125, %v250_v40 }
 0x19c   :  { %521 = vst [vmem:[#allocation2 + $0x18] sm:$0xff] %v505_v41  ;;  %v497_v56 = vadd.f32 %v892_v20, %v476_v43  ;;  %v424_v1 = vadd.f32 1e-05, %v392_v47  ;;  %v266_v32 = vpop.xlane.xlu1 %265  ;;  %v947_v6 = vmul.f32 0.0078125, %v248_v26  ;;  %v409_v42 = vsub.f32 %v824_v52, %v917_v2 }
 0x19d   :  { %v264_v25 = vpop.xlane.xlu0 %263  ;;  %520 = vst [vmem:[#allocation2 + $0x10] sm:$0xff] %v504_v48  ;;  %v496_v3 = vadd.f32 %v892_v20, %v475_v54  ;;  %638 = vrsqrt.f32 %v425_v55  ;;  %v949_v9 = vmul.f32 0.0078125, %v266_v32  ;;  %v355_v16 = vmul.f32 %v945_v5, %v945_v5 }
 0x19e   :  { %v513_v4 = vmax.f32 %v497_v56, 0.0  ;;  %640 = vrsqrt.f32 %v424_v1  ;;  %v953_v15 = vmul.f32 0.0078125, %v264_v25  ;;  %v354_v17 = vmul.f32 %v947_v6, %v947_v6 }
 0x19f   :  { %v512_v8 = vmax.f32 %v496_v3, 0.0  ;;  %v363_v39 = vmul.f32 %v949_v9, %v949_v9  ;;  %v408_v30 = vsub.f32 %v827_v53, %v925_v13  ;;  %v403_v1 = vsub.f32 %v842_v58, %v945_v5 }
 0x1a0   :  { %529 = vst [vmem:[#allocation2 + $0x58] sm:$0xff] %v513_v4  ;;  %v315_v10 = vpop.xlane.xlu1 %314  ;;  %v362_v44 = vmul.f32 %v953_v15, %v953_v15  ;;  %v402_v25 = vsub.f32 %v845_v59, %v947_v6 }
 0x1a1   :  { %v313_v12 = vpop.xlane.xlu0 %312  ;;  %528 = vst [vmem:[#allocation2 + $0x50] sm:$0xff] %v512_v8  ;;  %v339_v18 = vmul.f32 0.0078125, %v315_v10  ;;  %v411_v8 = vsub.f32 %v848_v60, %v949_v9 }
 0x1a2   :  { %v338_v19 = vmul.f32 0.0078125, %v313_v12 }
 0x1a3   :  { %v635_v21 = vpop.eup %634  ;;  %v371_v50 = vsub.f32 %v339_v18, %v355_v16 }
 0x1a4   :  { %v637_v22 = vpop.eup %636  ;;  %v449_v36 = vmul.f32 %v635_v21, %v401_v14  ;;  %v370_v63 = vsub.f32 %v338_v19, %v354_v17  ;;  %v331_v23 = vpop.xlane.xlu1 %330  ;;  %v410_v14 = vsub.f32 %v851_v61, %v953_v15 }
 0x1a5   :  { %v329_v24 = vpop.xlane.xlu0 %328  ;;  %v448_v27 = vmul.f32 %v637_v22, %v400_v7  ;;  %v347_v46 = vmul.f32 0.0078125, %v331_v23  ;;  %v387_v0 = vmax.f32 %v371_v50, 0.0 }
 0x1a6   :  { %v346_v28 = vmul.f32 0.0078125, %v329_v24  ;;  %v470_v51 = vmul.f32 %v881_v49, %v449_v36  ;;  %v386_v57 = vmax.f32 %v370_v63, 0.0 }
 0x1a7   :  { %v639_v29 = vpop.eup %638  ;;  %v469_v31 = vmul.f32 %v881_v49, %v448_v27  ;;  %v379_v33 = vsub.f32 %v347_v46, %v363_v39  ;;  %v419_v40 = vadd.f32 1e-05, %v387_v0 }
 0x1a8   :  { %v378_v34 = vsub.f32 %v346_v28, %v362_v44  ;;  %v641_v35 = vpop.eup %640  ;;  %v491_v37 = vadd.f32 %v892_v20, %v470_v51  ;;  %v457_v38 = vmul.f32 %v639_v29, %v409_v42  ;;  %v418_v26 = vadd.f32 1e-05, %v386_v57 }
 0x1a9   :  { %v490_v52 = vadd.f32 %v892_v20, %v469_v31  ;;  %v456_v2 = vmul.f32 %v641_v35, %v408_v30  ;;  %v395_v45 = vmax.f32 %v379_v33, 0.0  ;;  %642 = vrsqrt.f32 %v419_v40 }
 0x1aa   :  { %v394_v62 = vmax.f32 %v378_v34, 0.0  ;;  %v507_v11 = vmax.f32 %v491_v37, 0.0  ;;  %v478_v41 = vmul.f32 %v881_v49, %v457_v38  ;;  %644 = vrsqrt.f32 %v418_v26 }
 0x1ab   :  { %v506_v53 = vmax.f32 %v490_v52, 0.0  ;;  %v477_v13 = vmul.f32 %v881_v49, %v456_v2  ;;  %v427_v43 = vadd.f32 1e-05, %v395_v45 }
 0x1ac   :  { %523 = vst [vmem:[#allocation2 + $0x28] sm:$0xff] %v507_v11  ;;  %v499_v47 = vadd.f32 %v892_v20, %v478_v41  ;;  %v426_v48 = vadd.f32 1e-05, %v394_v62 }
 0x1ad   :  { %522 = vst [vmem:[#allocation2 + $0x20] sm:$0xff] %v506_v53  ;;  %v498_v54 = vadd.f32 %v892_v20, %v477_v13  ;;  %646 = vrsqrt.f32 %v427_v43 }
 0x1ae   :  { %v515_v55 = vmax.f32 %v499_v47, 0.0  ;;  %648 = vrsqrt.f32 %v426_v48 }
 0x1af   :  { %v514_v56 = vmax.f32 %v498_v54, 0.0 }
 0x1b0   :  { %531 = vst [vmem:[#allocation2 + $0x68] sm:$0xff] %v515_v55 }
 0x1b1   :  { %530 = vst [vmem:[#allocation2 + $0x60] sm:$0xff] %v514_v56 }
 0x1b3   :  { %v643_v32 = vpop.eup %642 }
 0x1b4   :  { %v645_v3 = vpop.eup %644  ;;  %v451_v4 = vmul.f32 %v643_v32, %v403_v1 }
 0x1b5   :  { %v450_v10 = vmul.f32 %v645_v3, %v402_v25 }
 0x1b6   :  { %v472_v16 = vmul.f32 %v881_v49, %v451_v4 }
 0x1b7   :  { %v647_v12 = vpop.eup %646  ;;  %v471_v18 = vmul.f32 %v881_v49, %v450_v10 }
 0x1b8   :  { %v649_v17 = vpop.eup %648  ;;  %v459_v58 = vmul.f32 %v647_v12, %v411_v8  ;;  %v493_v5 = vadd.f32 %v892_v20, %v472_v16 }
 0x1b9   :  { %v458_v19 = vmul.f32 %v649_v17, %v410_v14  ;;  %v492_v59 = vadd.f32 %v892_v20, %v471_v18 }
 0x1ba   :  { %v480_v6 = vmul.f32 %v881_v49, %v459_v58  ;;  %v509_v21 = vmax.f32 %v493_v5, 0.0 }
 0x1bb   :  { %v479_v60 = vmul.f32 %v881_v49, %v458_v19  ;;  %v508_v9 = vmax.f32 %v492_v59, 0.0 }
 0x1bc   :  { %v501_v7 = vadd.f32 %v892_v20, %v480_v6  ;;  %525 = vst [vmem:[#allocation2 + $0x38] sm:$0xff] %v509_v21 }
 0x1bd   :  { %v500_v61 = vadd.f32 %v892_v20, %v479_v60  ;;  %524 = vst [vmem:[#allocation2 + $0x30] sm:$0xff] %v508_v9 }
 0x1be   :  { %v517_v15 = vmax.f32 %v501_v7, 0.0 }
 0x1bf   :  { %v516_v22 = vmax.f32 %v500_v61, 0.0 }
 0x1c0   :  { %533 = vst [vmem:[#allocation2 + $0x78] sm:$0xff] %v517_v15 }
 0x1c1   :  { %532 = vst [vmem:[#allocation2 + $0x70] sm:$0xff] %v516_v22 }
 0x1c2   :  { %661 = shalt.err (!%p658_p4)
}
 0x1c3   :  { %s662_s26 = scalar_lea.hbm %s1008_s3, 2048 }
 0x1c4   :  { %p663_p5 = scmp.ne.s32.totalorder %s1008_s3, %s662_s26  ;;  %p666_p6 = scmp.lt.u32.totalorder %s662_s26, %s1008_s3 }
 0x1c6   :  { %p668_p7 = pnand %p666_p6, %p663_p5 }
 0x1c8   :  { %671 = shalt.err (!%p668_p7)
}
 0x1c9   :  { %s675_s4 = smov 128   ;;  %s676_s5 = smov 8  }
 0x1ca   :  { %545 = dma.vmem_to_hbm [thread:$0]  %s540_s22, 2048, %s1008_s3, [#allocation3], %s675_s4, %s675_s4, %s676_s5  }
 0x1cb   :  { %672 = dma.done.wait [#allocation3], 2048  }
 0x1cc   :  { %673 = vsyncadd [#allocation3], 4294965248 }
 0x1cd   :  { %549 = vsyncpa [#allocation3], 1 }

</bundles_post_ra>
